<compile_context>
chip_gen: v7x
topology: tpu7x:2x2x1
jax: 0.10.0
libtpu: 0.0.40
codegen_flags: <defaults>
</compile_context>

<pallas_src>
import functools

import numpy as np
import jax
import jax.numpy as jnp
from jax import lax
from jax.experimental import pallas as pl
from jax.experimental.pallas import tpu as pltpu


def _classifier_kernel(x_ref, w_ref, b_ref, o_ref, *, B, H, pad_max):
    """One block of B images per grid step.

    x_ref : (B, H, K)   f32   lane-dense flattened input rows (K = W*Cin)
    w_ref : (R*K, M)    bf16  all 3x3 taps of all convs folded, R = 2*pad_max+1
    b_ref : (1, M)      f32   summed biases tiled over W (M = W*Cout)
    o_ref : (B, H, M)   f32
    """
    K = x_ref.shape[-1]
    M = o_ref.shape[-1]
    R = 2 * pad_max + 1

    # Cast to bf16 in-kernel while assembling the LHS; the vertical zero halo
    # is written as part of the same concatenation (no separate halo scratch).
    xb = x_ref[...].astype(jnp.bfloat16)                       # (B, H, K)
    zero = jnp.zeros((B, pad_max, K), jnp.bfloat16)
    xpad = jnp.concatenate([zero, xb, zero], axis=1)           # (B, H+2p, K)

    # Fused LHS: slab r holds the rows shifted by (r - pad_max).  One K=R*K
    # contraction replaces R separate K=K matmuls.
    lhs = jnp.concatenate([xpad[:, r:r + H, :] for r in range(R)], axis=-1)
    lhs = lhs.reshape(B * H, R * K)                            # (B*H, R*K) bf16

    acc = jnp.dot(lhs, w_ref[...], preferred_element_type=jnp.float32)
    acc = acc + b_ref[...]                                     # bias broadcast
    o_ref[...] = acc.reshape(B, H, M).astype(o_ref.dtype)


def _fold_weights_np(weights, dilations, W, pad_max):
    """Fold every (conv, ki, kj) tap into one (R*K, M) matrix (host-side).

    weights: (n_convs, 3, 3, Cin, Cout) HWIO, numpy.
    Row index   = r*W*Cin + w_src*Cin + ci  with r = pad_max + (ki-1)*d,
    column index= w_out*Cout + co,          w_src = w_out + (kj-1)*d.
    Taps falling outside [0, W) are simply absent, implementing the
    horizontal zero padding; the vertical padding is the in-kernel halo.
    """
    weights = np.asarray(weights, np.float32)
    n_convs, _, _, Cin, Cout = weights.shape
    R = 2 * pad_max + 1
    wmat = np.zeros((R, W * Cin, W * Cout), np.float32)
    for c, d in enumerate(dilations):
        d = int(d)
        for ki in range(3):
            r = pad_max + (ki - 1) * d
            for kj in range(3):
                dj = (kj - 1) * d
                shift = np.eye(W, k=-dj, dtype=np.float32)   # [w_src, w_out]
                blk = np.einsum("ab,io->aibo", shift, weights[c, ki, kj])
                wmat[r] += blk.reshape(W * Cin, W * Cout)
    return wmat.reshape(R * W * Cin, W * Cout)


def make_classifier_layer(weights, biases, dilations, paddings, image_width,
                          *, max_images_per_step=128):
    """Fold parameters once and return a jitted forward (NHWC -> NHWC)."""
    dilations = tuple(int(d) for d in dilations)
    paddings = tuple(int(p) for p in paddings)
    # The module's outputs are only addable when every conv keeps the spatial
    # size, i.e. padding == dilation for a 3x3 / stride-1 conv.
    assert paddings == dilations, "requires 'same' convs (padding == dilation)"

    weights = np.asarray(weights, np.float32)   # (n_convs, 3, 3, Cin, Cout)
    biases = np.asarray(biases, np.float32)     # (n_convs, Cout)
    n_convs, _, _, Cin, Cout = weights.shape
    W = int(image_width)
    pad_max = max(dilations)
    R = 2 * pad_max + 1
    K = W * Cin          # contraction width per vertical offset (64)
    M = W * Cout         # lane-dense output row width (128)

    # One-time host-side folding (no per-call XLA dispatches).
    wmat = jnp.asarray(_fold_weights_np(weights, dilations, W, pad_max),
                       jnp.bfloat16)                                  # (R*K, M)
    b_row = jnp.asarray(np.tile(biases.sum(axis=0), W)[None, :],
                        np.float32)                                   # (1, M)

    @jax.jit
    def apply(x_nhwc):
        N, H, W_x, Cin_x = x_nhwc.shape
        assert W_x == W and Cin_x == Cin

        # Batch blocking: keep >= 2 "parallel" grid steps when N >= 2 so both
        # v7x TensorCores get a block; on single-TC chips (v5e/v6e) the extra
        # step costs only ~0.35us at these sizes.
        B = min(pl.cdiv(N, 2), max_images_per_step) if N >= 2 else 1
        steps = pl.cdiv(N, B)
        Npad = steps * B

        x_flat = x_nhwc.reshape(N, H, K)          # free reshape (Cin is last)
        if Npad != N:
            x_flat = jnp.pad(x_flat, ((0, Npad - N), (0, 0), (0, 0)))

        kernel = functools.partial(_classifier_kernel, B=B, H=H,
                                   pad_max=pad_max)
        out_flat = pl.pallas_call(
            kernel,
            out_shape=jax.ShapeDtypeStruct((Npad, H, M), jnp.float32),
            grid=(steps,),
            in_specs=[
                pl.BlockSpec((B, H, K), lambda n: (n, 0, 0)),
                pl.BlockSpec((R * K, M), lambda n: (0, 0)),
                pl.BlockSpec((1, M), lambda n: (0, 0)),
            ],
            out_specs=pl.BlockSpec((B, H, M), lambda n: (n, 0, 0)),
            compiler_params=pltpu.CompilerParams(
                dimension_semantics=("parallel",)),
        )(x_flat, wmat, b_row)

        return out_flat[:N].reshape(N, H, W, Cout)

    return apply


def classifier_layer_reference(x_nhwc, weights, biases, dilations, paddings):
    """Pure-JAX reference (matches torch Conv2d semantics, NHWC layout)."""
    out = None
    for c, (d, p) in enumerate(zip(dilations, paddings)):
        y = lax.conv_general_dilated(
            x_nhwc, weights[c],
            window_strides=(1, 1),
            padding=[(p, p), (p, p)],
            rhs_dilation=(d, d),
            dimension_numbers=("NHWC", "HWIO", "NHWC"),
            precision=lax.Precision.HIGHEST,
        ) + biases[c][None, None, None, :]
        out = y if out is None else out + y
    return out


if __name__ == "__main__":
    # Module hyper-parameters (small, deterministic).
    in_channels = 4
    n_labels = 8
    dilations = (1, 2)
    paddings = (1, 2)          # padding == dilation -> same spatial size
    n_convs = len(dilations)

    N, H, W = 2, 16, 16

    key = jax.random.PRNGKey(0)
    kx, kw, kb = jax.random.split(key, 3)

    # NCHW input (as the PyTorch module would see it), then convert to NHWC.
    x_nchw = jax.random.normal(kx, (N, in_channels, H, W), dtype=jnp.float32)
    x_nhwc = jnp.transpose(x_nchw, (0, 2, 3, 1))

    # Conv weights ~ N(0, 0.01) like init_weights(); deterministic bias init.
    weights = 0.01 * jax.random.normal(
        kw, (n_convs, 3, 3, in_channels, n_labels), dtype=jnp.float32)
    biases = 0.01 * jax.random.normal(kb, (n_convs, n_labels), dtype=jnp.float32)

    layer = make_classifier_layer(weights, biases, dilations, paddings, W)
    out = jax.block_until_ready(layer(x_nhwc))

    ref = jax.block_until_ready(
        classifier_layer_reference(x_nhwc, weights, biases, dilations, paddings))

    max_err = float(jnp.max(jnp.abs(out - ref)))
    assert out.shape == (N, H, W, n_labels), out.shape
    assert max_err < 1e-2, f"max abs error too large: {max_err}"

    print("KERNEL_OK")
</pallas_src>

<mosaic_0001>
module attributes {stable_mosaic.version = 11 : i64} {
  func.func @_classifier_kernel(%arg0: i32, %arg1: memref<1x16x64xf32, #tpu.memory_space<vmem>>, %arg2: memref<320x128xbf16, #tpu.memory_space<vmem>>, %arg3: memref<1x128xf32, #tpu.memory_space<vmem>>, %arg4: memref<1x16x128xf32, #tpu.memory_space<vmem>>) attributes {dimension_semantics = [#tpu.dimension_semantics<parallel>], iteration_bounds = array<i64: 2>, scalar_prefetch = 0 : i64, scratch_operands = 0 : i64, tpu.core_type = #tpu.core_type<tc>, window_params = [{transform_indices = @transform_0, window_bounds = array<i64: 1, 16, 64>}, {pipeline_mode = #tpu.pipeline_mode<synchronous>, transform_indices = @transform_1, window_bounds = array<i64: 320, 128>}, {pipeline_mode = #tpu.pipeline_mode<synchronous>, transform_indices = @transform_2, window_bounds = array<i64: 1, 128>}, {transform_indices = @transform_3, window_bounds = array<i64: 1, 16, 128>}]} {
    %c0 = arith.constant 0 : index
    %c0_0 = arith.constant 0 : index
    %c0_1 = arith.constant 0 : index
    %0 = vector.load %arg1[%c0, %c0_0, %c0_1] : memref<1x16x64xf32, #tpu.memory_space<vmem>>, vector<1x16x64xf32>
    %1 = arith.truncf %0 : vector<1x16x64xf32> to vector<1x16x64xbf16>
    %cst = arith.constant 0.000000e+00 : bf16
    %2 = vector.broadcast %cst : bf16 to vector<1x2x64xbf16>
    %3 = tpu.concatenate %2, %1, %2 in 1 : vector<1x2x64xbf16>, vector<1x16x64xbf16>, vector<1x2x64xbf16> -> vector<1x20x64xbf16>
    %4 = vector.extract_strided_slice %3 {offsets = [0, 0, 0], sizes = [1, 16, 64], strides = [1, 1, 1]} : vector<1x20x64xbf16> to vector<1x16x64xbf16>
    %5 = vector.extract_strided_slice %3 {offsets = [0, 1, 0], sizes = [1, 16, 64], strides = [1, 1, 1]} : vector<1x20x64xbf16> to vector<1x16x64xbf16>
    %6 = vector.extract_strided_slice %3 {offsets = [0, 2, 0], sizes = [1, 16, 64], strides = [1, 1, 1]} : vector<1x20x64xbf16> to vector<1x16x64xbf16>
    %7 = vector.extract_strided_slice %3 {offsets = [0, 3, 0], sizes = [1, 16, 64], strides = [1, 1, 1]} : vector<1x20x64xbf16> to vector<1x16x64xbf16>
    %8 = vector.extract_strided_slice %3 {offsets = [0, 4, 0], sizes = [1, 16, 64], strides = [1, 1, 1]} : vector<1x20x64xbf16> to vector<1x16x64xbf16>
    %9 = tpu.concatenate %4, %5, %6, %7, %8 in 2 : vector<1x16x64xbf16>, vector<1x16x64xbf16>, vector<1x16x64xbf16>, vector<1x16x64xbf16>, vector<1x16x64xbf16> -> vector<1x16x320xbf16>
    %10 = vector.shape_cast %9 : vector<1x16x320xbf16> to vector<16x320xbf16>
    %c0_2 = arith.constant 0 : index
    %c0_3 = arith.constant 0 : index
    %11 = vector.load %arg2[%c0_2, %c0_3] : memref<320x128xbf16, #tpu.memory_space<vmem>>, vector<320x128xbf16>
    %cst_4 = arith.constant dense<0.000000e+00> : vector<16x128xf32>
    %12 = tpu.matmul %10, %11, %cst_4 {dimension_numbers = #tpu.dot_dimension_numbers<[1], [0], [0], [1], [0, 0, 1, 1], [], []>} : vector<16x320xbf16>, vector<320x128xbf16>, vector<16x128xf32> -> vector<16x128xf32>
    %c0_5 = arith.constant 0 : index
    %c0_6 = arith.constant 0 : index
    %13 = vector.load %arg3[%c0_5, %c0_6] : memref<1x128xf32, #tpu.memory_space<vmem>>, vector<1x128xf32>
    %14 = vector.broadcast %13 : vector<1x128xf32> to vector<16x128xf32>
    %15 = arith.addf %12, %14 : vector<16x128xf32>
    %16 = vector.shape_cast %15 : vector<16x128xf32> to vector<1x16x128xf32>
    %c0_7 = arith.constant 0 : index
    %c0_8 = arith.constant 0 : index
    %c0_9 = arith.constant 0 : index
    %17 = vector.load %arg4[%c0_7, %c0_8, %c0_9] : memref<1x16x128xf32, #tpu.memory_space<vmem>>, vector<1x16x128xf32>
    tpu.vector_store %arg4[%c0_7, %c0_8, %c0_9], %16 {strides = array<i32>} : memref<1x16x128xf32, #tpu.memory_space<vmem>>, vector<1x16x128xf32>,
    return
  }
  func.func @transform_0(%arg0: i32) -> (i32, i32, i32) {
    %c0_i32 = arith.constant 0 : i32
    %c0_i32_0 = arith.constant 0 : i32
    %c0_i32_1 = arith.constant 0 : i32
    return %arg0, %c0_i32, %c0_i32_0 : i32, i32, i32
  }
  func.func @transform_1(%arg0: i32) -> (i32, i32) {
    %c0_i32 = arith.constant 0 : i32
    %c0_i32_0 = arith.constant 0 : i32
    %c0_i32_1 = arith.constant 0 : i32
    return %c0_i32, %c0_i32_0 : i32, i32
  }
  func.func @transform_2(%arg0: i32) -> (i32, i32) {
    %c0_i32 = arith.constant 0 : i32
    %c0_i32_0 = arith.constant 0 : i32
    %c0_i32_1 = arith.constant 0 : i32
    return %c0_i32, %c0_i32_0 : i32, i32
  }
  func.func @transform_3(%arg0: i32) -> (i32, i32, i32) {
    %c0_i32 = arith.constant 0 : i32
    %c0_i32_0 = arith.constant 0 : i32
    %c0_i32_1 = arith.constant 0 : i32
    return %arg0, %c0_i32, %c0_i32_0 : i32, i32, i32
  }
}

</mosaic_0001>

<bundles_post_ra>
// kernel: apply.1
= control target key start
LH: loop header
LB: loop body
LE: loop exit
PB: predicated region body
PF: predicated region fallthrough
CT: control target
= control target key end

     0   :  { %s670_s12 = smov 0   ;;  %s766_s0 = inlined_call_operand.vmem [shape: f32[2,16,64], index: 0, kind: input, shape index: {}]   ;;  %s767_s1 = inlined_call_operand.vmem [shape: bf16[320,128], index: 1, kind: input, shape index: {}]   ;;  %s768_s2 = inlined_call_operand.vmem [shape: f32[1,128], index: 2, kind: input, shape index: {}]   ;;  %s769_s3 = inlined_call_operand.vmem [shape: f32[2,16,128], index: 3, kind: output, shape index: {}]  }
   0x1 LB: > { %s534_s13 = sadd.s32 4294967295, %s645_s12   ;;  %p538_p0 = scmp.ge.s32.totalorder %s645_s12, 1  ;;  %s645_s12 = sphi %s670_s12, %s13_s12  }
   0x2   : > { %p137_p1 = scmp.lt.s32.totalorder %s645_s12, 3 }
   0x4   : > { %p138_p2 = pnand %p538_p0, %p137_p1 }
   0x5   : > { %p161_p3 = scmp.lt.s32.totalorder (!%p138_p2), %s534_s13, 1  ;;  %v619_v0 = vld [vmem:[%s767_s1 + $0x40] sm:$0xff] (!%p138_p2)   ;;  %v621_v2 = vld [vmem:[%s767_s1 + $0x48] sm:$0xff] (!%p138_p2)   ;;  %v647_v4 = vmov (!%p138_p2), 0.0   ;;  %v623_v5 = vld [vmem:[%s767_s1 + $0x50] sm:$0xff] (!%p138_p2)   ;;  %vm177_vm1 = vcmask (!%p138_p2), 1040384  }
   0x6   : > { %141 = sbr.rel (%p138_p2) target bundleno = 371 (0x173), region = 32  ;;  %569 = vmatprep.subr.bf16.mxu0 (!%p138_p2), %v619_v0  ;;  %v620_v1 = vld [vmem:[%s767_s1] sm:$0xff] (!%p138_p2)   ;;  %v622_v3 = vld [vmem:[%s767_s1 + $0x8] sm:$0xff] (!%p138_p2)   ;;  %596 = vmatprep.subr.bf16.mxu1 (!%p138_p2), %v647_v4  ;;  %vm201_vm0 = vsmask.f32 (!%p138_p2), 6400  ;;  %v624_v9 = vld [vmem:[%s767_s1 + $0x10] sm:$0xff] (!%p138_p2)  }
   0x7   : > { %570 = vmatpush3.bf16.msra.mxu0 (!%p138_p2), %v620_v1  ;;  %vm182_vm2 = vsmask.f32 (!%p138_p2), 7424  ;;  %v625_v11 = vld [vmem:[%s767_s1 + $0x58] sm:$0xff] (!%p138_p2)   ;;  %v627_v15 = vld [vmem:[%s767_s1 + $0x60] sm:$0xff] (!%p138_p2)   ;;  %v632_v30 = vld [vmem:[%s767_s1 + $0x88] sm:$0xff] (!%p138_p2)   ;;  %s648_s19 = smov (!%p138_p2), 64  }
   0x8   : > { %571 = vmatprep.subr.bf16.mxu0 (!%p138_p2), %v621_v2  ;;  %v626_v12 = vld [vmem:[%s767_s1 + $0x18] sm:$0xff] (!%p138_p2)   ;;  %v629_v16 = vld [vmem:[%s767_s1 + $0x80] sm:$0xff] (!%p138_p2)   ;;  %v630_v32 = vld [vmem:[%s767_s1 + $0x68] sm:$0xff] (!%p138_p2)   ;;  %vm649_vm3 = vmmov (!%p138_p2), 0   ;;  %vm213_vm4 = vcmask (!%p138_p2), 1045504   ;;  %vm217_vm5 = vcmask (!%p138_p2), 523264  }
   0x9   : > { %597 = vmatpush3.bf16.msra.mxu1 (!%p138_p2), %v629_v16  ;;  %v628_v26 = vld [vmem:[%s767_s1 + $0x20] sm:$0xff] (!%p138_p2)   ;;  %v635_v34 = vld [vmem:[%s767_s1 + $0x90] sm:$0xff] (!%p138_p2)   ;;  %v631_v36 = vld [vmem:[%s767_s1 + $0x28] sm:$0xff] (!%p138_p2)   ;;  %604 = vmatprep.mubr.msk.bf16.mxu1 (!%p138_p2), %vm649_vm3, %v647_v4  ;;  %vm197_vm6 = vcmask (!%p138_p2), 1046528  }
   0xa   : > { %598 = vmatprep.subr.bf16.mxu1 (!%p138_p2), %v647_v4  ;;  %v633_v37 = vld [vmem:[%s767_s1 + $0x70] sm:$0xff] (!%p138_p2)   ;;  %v638_v39 = vld [vmem:[%s767_s1 + $0x98] sm:$0xff] (!%p138_p2)   ;;  %v543_v58 = vld [vmem:[%s768_s2] ss:$0 sm:$0xff] (!%p138_p2) }
   0xb   : > { %572 = vmatpush3.bf16.msra.mxu0 (!%p138_p2), %v622_v3  ;;  %v634_v41 = vld [vmem:[%s767_s1 + $0x30] sm:$0xff] (!%p138_p2)   ;;  %v636_v42 = vld [vmem:[%s767_s1 + $0x78] sm:$0xff] (!%p138_p2)  }
   0xc   : > { %573 = vmatprep.subr.bf16.mxu0 (!%p138_p2), %v623_v5  ;;  %v637_v44 = vld [vmem:[%s767_s1 + $0x38] sm:$0xff] (!%p138_p2)  }
   0xd   : > { %s771_s13 = smov (!%p161_p3, %s534_s13), 1  ;;  %599 = vmatpush3.bf16.msra.mxu1 %v632_v30 }
   0xe   : > { %s567_s20 = sshll.u32 %s771_s13, 4  ;;  %600 = vmatprep.subr.bf16.mxu1 %v647_v4 }
   0xf   : > { %s165_s25 = scalar_lea.vmem %s766_s0, %s567_s20  ;;  %574 = vmatpush3.bf16.msra.mxu0 %v624_v9  ;;  %s170_s14 = scalar_lea.vmem %s769_s3, %s567_s20 }
  0x10   : > { %v172_v6 = vld [vmem:[%s165_s25] sm:$0xff]  ;;  %v173_v7 = vld [vmem:[%s165_s25 + $0x8] sm:$0xff]  ;;  %575 = vmatprep.subr.bf16.mxu0 %v625_v11 }
  0x11   : > { %v174_v8 = vpack.c.bf16 %v173_v7, %v172_v6  ;;  %601 = vmatpush3.bf16.msra.mxu1 %v635_v34 }
  0x12   : > { %602 = vmatprep.subr.bf16.mxu1 %v647_v4 }
  0x13   : > { %v176_v10 = vrot.slane %v174_v8, 7  ;;  %576 = vmatpush3.bf16.msra.mxu0 %v626_v12 }
  0x14   : > { %577 = vmatprep.subr.bf16.mxu0 %v627_v15 }
  0x15   : > { %v710_v13 = vsel %vm177_vm1, 0, %v176_v10  ;;  %v181_v14 = vsel %vm177_vm1, %v176_v10, 0  ;;  %603 = vmatpush3.bf16.msra.mxu1 %v638_v39 }
  0x16   : > { %v183_v17 = vshrl.u32 %v710_v13, 16  ;;  %v185_v18 = vshll.u32 %v710_v13, 16  ;;  %v189_v19 = vshll.u32 %v181_v14, 16  ;;  %v205_v20 = vshrl.u32 %v181_v14, 16 }
  0x17   : > { %578 = vmatpush3.bf16.msra.mxu0 %v628_v26  ;;  %v214_v38 = vrot.slane %v710_v13, 2  ;;  %v215_v40 = vrot.slane %v181_v14, 2  ;;  %v198_v45 = vrot.slane %v710_v13, 1  ;;  %v199_v46 = vrot.slane %v181_v14, 1 }
  0x18   : > { %v202_v21 = vrot.slane %v183_v17, 1  ;;  %v203_v22 = vrot.slane %v185_v18, 2  ;;  %v207_v23 = vrot.slane %v205_v20, 1  ;;  %v208_v24 = vrot.slane %v189_v19, 2  ;;  %579 = vmatprep.subr.bf16.mxu0 %v630_v32 }
  0x19   : > { %v187_v25 = vrot.slane %v185_v18, 1  ;;  %v191_v29 = vrot.slane %v189_v19, 1  ;;  %v216_v43 = vsel %vm213_vm4, %v214_v38, %v215_v40  ;;  %v200_v47 = vsel %vm197_vm6, %v198_v45, %v199_v46 }
  0x1a   : > { %v204_v27 = vor.u32 %v203_v22, %v202_v21  ;;  %v209_v28 = vor.u32 %v208_v24, %v207_v23  ;;  %605 = vmatmul.mubr.msk.bf16.vlgmr.msra.gmra.mrb[0].mxu1 %vm217_vm5, %v216_v43 }
  0x1b   : > { %v188_v31 = vor.u32 %v187_v25, %v183_v17  ;;  %580 = vmatpush3.bf16.msra.mxu0 %v631_v36 }
  0x1c   : > { %v210_v33 = vsel %vm201_vm0, %v204_v27, %v209_v28  ;;  %581 = vmatprep.subr.bf16.mxu0 %v633_v37 }
  0x1d   : > { %211 = vrot.lane.b32.xlu0 %v210_v33, %s648_s19  ;;  %v192_v35 = vsel %vm182_vm2, %v188_v31, %v191_v29 }
  0x1f   : > { %582 = vmatpush3.bf16.msra.mxu0 %v634_v41 }
  0x20   : > { %583 = vmatprep.subr.bf16.mxu0 %v636_v42 }
  0x21   : > { %193 = vrot.lane.b32.xlu0 %v192_v35, %s648_s19 }
  0x23   : > { %584 = vmatpush3.bf16.msra.mxu0 %v637_v44 }
  0x8f   : > { %v212_v48 = vpop.permute.xlu0 %211 }
  0x90   : > { %v223_v49 = vsel %vm217_vm5, %v200_v47, %v212_v48 }
  0x91   : > { %427 = vmatprep.mubr.bf16.mxu0 %v223_v49 }
  0x93   : > { %v194_v50 = vpop.permute.xlu0 %193 }
  0x94   : > { %v219_v51 = vsel %vm217_vm5, %v710_v13, %v194_v50 }
  0x95   : > { %428 = vmatmul.mubr.bf16.vlgmr.msra.gmra.mrb[0].mxu0 %v219_v51 }
  0xed   : > { %v470_v52 = vpop.f32.mrb[0].mxu1 }
  0xee   : > { %v606_v53 = vpop.f32.mrb[1].mxu1 }
  0xef   : > { %v473_v54 = vpop.f32.mrb[2].mxu1 }
  0xf0   : > { %v607_v55 = vpop.f32.mrb[3].mxu1 }
 0x168   : > { %v585_v56 = vpop.f32.mrb[0].mxu0 }
 0x169   : > { %v586_v57 = vpop.f32.mrb[1].mxu0 }
 0x16a   : > { %v587_v59 = vadd.f32 %v586_v57, %v585_v56  ;;  %v588_v60 = vpop.f32.mrb[2].mxu0 }
 0x16b   : > { %v589_v61 = vpop.f32.mrb[3].mxu0 }
 0x16c   : > { %v430_v62 = vadd.f32 %v587_v59, %v543_v58  ;;  %v590_v63 = vadd.f32 %v589_v61, %v588_v60 }
 0x16e   : > { %v471_v0 = vadd.f32 %v470_v52, %v430_v62  ;;  %v433_v1 = vadd.f32 %v590_v63, %v543_v58 }
 0x170   : > { %477 = vst [vmem:[%s170_s14] sm:$0xff] %v471_v0  ;;  %v474_v2 = vadd.f32 %v473_v54, %v433_v1 }
 0x172   : > { %478 = vst [vmem:[%s170_s14 + $0x8] sm:$0xff] %v474_v2 }
 0x173 PF: > { %s13_s12 = sadd.s32 1, %s645_s12  }
 0x174   : > { %p10_p4 = scmp.ge.s32.totalorder %s13_s12, 4  }
 0x176   :  { %12 = sbr.rel (!%p10_p4) target bundleno = 1 (0x1), region = 62 }

</bundles_post_ra>
